<compile_context>
chip_gen: v7x
topology: tpu7x:2x2x1
jax: 0.10.0
libtpu: 0.0.40
codegen_flags: <defaults>
</compile_context>

<pallas_src>
import math

import jax
import jax.numpy as jnp
from jax.experimental import pallas as pl
from jax.experimental.pallas import tpu as pltpu


def affinity_mah_kernel(ya_ref, xat_ref, qy_ref, qx_ref, o_ref):
    # ya_ref: (1, TY, k)   xat_ref: (1, k, TX)   <- native MXU lhs/rhs layouts
    # qy_ref: (1, TY, 1)   qx_ref:  (1, 1, TX)   o_ref: (1, TY, TX)
    ya = ya_ref[0] * (-2.0)          # fold -2 into the small (TY, k) operand
    xat = xat_ref[0]                  # (k, TX)

    # cross[i, j] = -2 * (A^T y_i) . (A^T x_j)  -- single MXU matmul, f32 acc
    cross = jax.lax.dot_general(
        ya, xat, (((1,), (0,)), ((), ())), preferred_element_type=jnp.float32
    )                                                            # (TY, TX)

    # quad[i, j] = ||A^T y_i||^2 + ||A^T x_j||^2 - 2 (A^T y_i).(A^T x_j)
    quad = cross + qy_ref[0] + qx_ref[0]                         # broadcast adds
    o_ref[0] = jnp.maximum(quad, 0.0).astype(o_ref.dtype)        # ReLU + cast


def affinity_mah(X, Y, A, *, ty_max=256, tx_max=1024,
                 matmul_dtype=None, out_dtype=None):
    B, Nx, d = X.shape
    _, Ny, dy = Y.shape
    assert d == dy == A.shape[0]
    k = A.shape[1]
    # Tile-size hygiene: required for the (8,128) BlockSpec rule and for
    # lane-dense (unmasked) output stores when the dims are tiled.
    assert ty_max % 8 == 0, "ty_max must be a multiple of 8"
    assert tx_max % 128 == 0, "tx_max must be a multiple of 128"

    out_dtype = X.dtype if out_dtype is None else jnp.dtype(out_dtype)

    # Hoist the A projection out of the kernel (exact algebraic rewrite).
    # XA is produced transposed, (B, k, Nx): native MXU rhs layout, contiguous
    # lane-major DMA rows of length TX.
    XA_T = jnp.einsum("bnd,dk->bkn", X, A)            # (B, k, Nx)
    YA = jnp.einsum("bnd,dk->bnk", Y, A)              # (B, Ny, k)
    qx = jnp.sum(XA_T * XA_T, axis=1)[:, None, :]     # (B, 1, Nx)  lane-major
    qy = jnp.sum(YA * YA, axis=-1)[:, :, None]        # (B, Ny, 1)

    if matmul_dtype is not None:
        # Only the matmul operands drop precision; qx/qy + accumulate stay f32.
        XA_T = XA_T.astype(matmul_dtype)
        YA = YA.astype(matmul_dtype)

    # Use the full dim when it is smaller than the target tile (satisfies the
    # "(8,128)-divisible or full-dim" BlockSpec constraint); otherwise tile.
    TY = Ny if Ny <= ty_max else ty_max               # multiple of 8 when tiled
    TX = Nx if Nx <= tx_max else tx_max               # multiple of 128 when tiled

    grid = (B, pl.cdiv(Ny, TY), pl.cdiv(Nx, TX))      # (batch, Ny-tiles, Nx-tiles)

    out_bytes = jnp.dtype(out_dtype).itemsize
    op_bytes = jnp.dtype(XA_T.dtype).itemsize

    # Double-buffered VMEM footprint estimate; only raise the scoped limit if
    # we approach the smallest (v5e, 16 MiB) default.
    est_vmem = 2 * (TY * TX * max(out_bytes, 4)
                    + k * TX * op_bytes + TX * 4
                    + TY * k * op_bytes + TY * 4)
    vmem_limit = None
    if est_vmem > 12 * 1024 * 1024:
        vmem_limit = int(min(2 * est_vmem, 56 * 1024 * 1024))

    cost = pl.CostEstimate(
        flops=2 * B * Ny * Nx * k,
        transcendentals=0,
        bytes_accessed=(B * Ny * Nx * out_bytes                 # output writes
                        + B * (Nx + Ny) * k * op_bytes          # XA^T, YA reads
                        + B * (Nx + Ny) * 4),                   # qx, qy reads
    )

    return pl.pallas_call(
        affinity_mah_kernel,
        out_shape=jax.ShapeDtypeStruct((B, Ny, Nx), out_dtype),
        grid_spec=pl.GridSpec(
            grid=grid,
            in_specs=[
                # Y-side blocks: constant index across inner j -> VMEM-resident.
                pl.BlockSpec((1, TY, k), lambda b, i, j: (b, i, 0)),   # YA
                pl.BlockSpec((1, k, TX), lambda b, i, j: (b, 0, j)),   # XA^T
                pl.BlockSpec((1, TY, 1), lambda b, i, j: (b, i, 0)),   # qy
                pl.BlockSpec((1, 1, TX), lambda b, i, j: (b, 0, j)),   # qx
            ],
            out_specs=pl.BlockSpec((1, TY, TX), lambda b, i, j: (b, i, j)),
        ),
        compiler_params=pltpu.CompilerParams(
            dimension_semantics=("parallel", "parallel", "arbitrary"),
            vmem_limit_bytes=vmem_limit,
        ),
        cost_estimate=cost,
    )(YA, XA_T, qy, qx)


def affinity_mah_reference(X, Y, A):
    # Direct translation of the PyTorch forward (pure JAX, host-side check).
    M = A @ A.T                                   # (d, d)
    dxy = X[:, None, :, :] - Y[:, :, None, :]     # (B, Ny, Nx, d)
    quad = jnp.einsum("bijd,de,bije->bij", dxy, M, dxy)
    return jnp.maximum(quad, 0.0)


if __name__ == "__main__":
    key = jax.random.PRNGKey(0)
    kx, ky, ka, kx2, ky2 = jax.random.split(key, 5)

    # ---- Test 1: small shapes consistent with the module ----
    B, Nx, Ny, d, k = 2, 16, 8, 32, 16
    stdv = 1.0 / math.sqrt(d)   # reset_parameters(): uniform(-1/sqrt(d), 1/sqrt(d))
    A = jax.random.uniform(ka, (d, k), minval=-stdv, maxval=stdv,
                           dtype=jnp.float32)
    X = jax.random.normal(kx, (B, Nx, d), dtype=jnp.float32)
    Y = jax.random.normal(ky, (B, Ny, d), dtype=jnp.float32)

    out = affinity_mah(X, Y, A)
    out = jax.block_until_ready(out)
    ref = affinity_mah_reference(X, Y, A)
    assert out.shape == (B, Ny, Nx)
    assert jnp.allclose(out, ref, rtol=1e-4, atol=1e-4), (
        float(jnp.max(jnp.abs(out - ref)))
    )

    # ---- Test 2: exercise tiled + ragged edge-tile path (small tile maxes) ----
    B2, Nx2, Ny2 = 1, 300, 20
    X2 = jax.random.normal(kx2, (B2, Nx2, d), dtype=jnp.float32)
    Y2 = jax.random.normal(ky2, (B2, Ny2, d), dtype=jnp.float32)
    out2 = affinity_mah(X2, Y2, A, ty_max=8, tx_max=128)
    out2 = jax.block_until_ready(out2)
    ref2 = affinity_mah_reference(X2, Y2, A)
    assert out2.shape == (B2, Ny2, Nx2)
    assert jnp.allclose(out2, ref2, rtol=1e-4, atol=1e-4), (
        float(jnp.max(jnp.abs(out2 - ref2)))
    )

    print("KERNEL_OK")
</pallas_src>

<mosaic_0001>
module attributes {stable_mosaic.version = 11 : i64} {
  func.func @affinity_mah_kernel(%arg0: i32, %arg1: i32, %arg2: i32, %arg3: memref<1x8x16xf32, #tpu.memory_space<vmem>>, %arg4: memref<1x16x16xf32, #tpu.memory_space<vmem>>, %arg5: memref<1x8x1xf32, #tpu.memory_space<vmem>>, %arg6: memref<1x1x16xf32, #tpu.memory_space<vmem>>, %arg7: memref<1x8x16xf32, #tpu.memory_space<vmem>>) attributes {dimension_semantics = [#tpu.dimension_semantics<parallel>, #tpu.dimension_semantics<parallel>, #tpu.dimension_semantics<arbitrary>], iteration_bounds = array<i64: 2, 1, 1>, scalar_prefetch = 0 : i64, scratch_operands = 0 : i64, tpu.core_type = #tpu.core_type<tc>, window_params = [{transform_indices = @transform_0, window_bounds = array<i64: 1, 8, 16>}, {transform_indices = @transform_1, window_bounds = array<i64: 1, 16, 16>}, {transform_indices = @transform_2, window_bounds = array<i64: 1, 8, 1>}, {transform_indices = @transform_3, window_bounds = array<i64: 1, 1, 16>}, {transform_indices = @transform_4, window_bounds = array<i64: 1, 8, 16>}]} {
    %c0 = arith.constant 0 : index
    %c0_0 = arith.constant 0 : index
    %c0_1 = arith.constant 0 : index
    %0 = vector.load %arg3[%c0, %c0_0, %c0_1] : memref<1x8x16xf32, #tpu.memory_space<vmem>>, vector<1x8x16xf32>
    %1 = vector.shape_cast %0 : vector<1x8x16xf32> to vector<8x16xf32>
    %cst = arith.constant -2.000000e+00 : f32
    %2 = vector.broadcast %cst : f32 to vector<8x16xf32>
    %3 = arith.mulf %1, %2 : vector<8x16xf32>
    %c0_2 = arith.constant 0 : index
    %c0_3 = arith.constant 0 : index
    %c0_4 = arith.constant 0 : index
    %4 = vector.load %arg4[%c0_2, %c0_3, %c0_4] : memref<1x16x16xf32, #tpu.memory_space<vmem>>, vector<1x16x16xf32>
    %5 = vector.shape_cast %4 : vector<1x16x16xf32> to vector<16x16xf32>
    %cst_5 = arith.constant dense<0.000000e+00> : vector<8x16xf32>
    %6 = tpu.matmul %3, %5, %cst_5 {dimension_numbers = #tpu.dot_dimension_numbers<[1], [0], [0], [1], [0, 0, 1, 1], [], []>} : vector<8x16xf32>, vector<16x16xf32>, vector<8x16xf32> -> vector<8x16xf32>
    %c0_6 = arith.constant 0 : index
    %c0_7 = arith.constant 0 : index
    %c0_8 = arith.constant 0 : index
    %7 = vector.load %arg5[%c0_6, %c0_7, %c0_8] : memref<1x8x1xf32, #tpu.memory_space<vmem>>, vector<1x8x1xf32>
    %8 = vector.shape_cast %7 : vector<1x8x1xf32> to vector<8x1xf32>
    %9 = vector.broadcast %8 : vector<8x1xf32> to vector<8x16xf32>
    %10 = arith.addf %6, %9 : vector<8x16xf32>
    %c0_9 = arith.constant 0 : index
    %c0_10 = arith.constant 0 : index
    %c0_11 = arith.constant 0 : index
    %11 = vector.load %arg6[%c0_9, %c0_10, %c0_11] : memref<1x1x16xf32, #tpu.memory_space<vmem>>, vector<1x1x16xf32>
    %12 = vector.shape_cast %11 : vector<1x1x16xf32> to vector<1x16xf32>
    %13 = vector.broadcast %12 : vector<1x16xf32> to vector<8x16xf32>
    %14 = arith.addf %10, %13 : vector<8x16xf32>
    %cst_12 = arith.constant 0.000000e+00 : f32
    %15 = vector.broadcast %cst_12 : f32 to vector<8x16xf32>
    %16 = arith.maximumf %14, %15 : vector<8x16xf32>
    %c0_13 = arith.constant 0 : index
    %c0_14 = arith.constant 0 : index
    %c0_15 = arith.constant 0 : index
    %17 = vector.load %arg7[%c0_13, %c0_14, %c0_15] : memref<1x8x16xf32, #tpu.memory_space<vmem>>, vector<1x8x16xf32>
    %18 = vector.shape_cast %17 : vector<1x8x16xf32> to vector<8x16xf32>
    %19 = vector.shape_cast %16 : vector<8x16xf32> to vector<1x8x16xf32>
    tpu.vector_store %arg7[%c0_13, %c0_14, %c0_15], %19 {strides = array<i32>} : memref<1x8x16xf32, #tpu.memory_space<vmem>>, vector<1x8x16xf32>,
    return
  }
  func.func @transform_0(%arg0: i32, %arg1: i32, %arg2: i32) -> (i32, i32, i32) {
    %c0_i32 = arith.constant 0 : i32
    %c0_i32_0 = arith.constant 0 : i32
    return %arg0, %arg1, %c0_i32 : i32, i32, i32
  }
  func.func @transform_1(%arg0: i32, %arg1: i32, %arg2: i32) -> (i32, i32, i32) {
    %c0_i32 = arith.constant 0 : i32
    %c0_i32_0 = arith.constant 0 : i32
    return %arg0, %c0_i32, %arg2 : i32, i32, i32
  }
  func.func @transform_2(%arg0: i32, %arg1: i32, %arg2: i32) -> (i32, i32, i32) {
    %c0_i32 = arith.constant 0 : i32
    %c0_i32_0 = arith.constant 0 : i32
    return %arg0, %arg1, %c0_i32 : i32, i32, i32
  }
  func.func @transform_3(%arg0: i32, %arg1: i32, %arg2: i32) -> (i32, i32, i32) {
    %c0_i32 = arith.constant 0 : i32
    %c0_i32_0 = arith.constant 0 : i32
    return %arg0, %c0_i32, %arg2 : i32, i32, i32
  }
  func.func @transform_4(%arg0: i32, %arg1: i32, %arg2: i32) -> (i32, i32, i32) {
    %c0_i32 = arith.constant 0 : i32
    return %arg0, %arg1, %arg2 : i32, i32, i32
  }
}

</mosaic_0001>

<bundles_post_ra>
// kernel: tpu_custom_call.1
= control target key start
LH: loop header
LB: loop body
LE: loop exit
PB: predicated region body
PF: predicated region fallthrough
CT: control target
= control target key end

     0   :  { %9 = vsyncpa [#allocation3], 0  ;;  %s995_s0 = inlined_call_operand.vmem [shape: f32[2,8,16], index: 0, kind: input, shape index: {}]   ;;  %s996_s1 = inlined_call_operand.hbm [shape: f32[2,16,16], index: 1, kind: input, shape index: {}]   ;;  %s997_s2 = inlined_call_operand.vmem [shape: f32[2,8,1], index: 2, kind: input, shape index: {}]   ;;  %s998_s3 = inlined_call_operand.vmem [shape: f32[2,1,16], index: 3, kind: input, shape index: {}]   ;;  %s999_s4 = inlined_call_operand.hbm [shape: f32[2,8,16], index: 4, kind: output, shape index: {}]  }
   0x1   :  { %11 = vsyncpa [#allocation3 + $0x1], 0 }
   0x2   :  { %12 = vsyncpa [#allocation4], 0 }
   0x3   :  { %14 = vsyncpa [#allocation4 + $0x1], 0  ;;  %s808_s15 = smov 0   ;;  %s810_s16 = smov 0  }
   0x4   :  { %s812_s17 = smov 0   ;;  %s814_s18 = smov 0  }
   0x5   :  { %s816_s19 = smov 0   ;;  %s818_s20 = smov 0  }
   0x6 LB: > { %s560_s21 = sadd.s32 4294967295, %s773_s20   ;;  %s561_s22 = sadd.s32 4294967294, %s773_s20   ;;  %s773_s20 = sphi %s818_s20, %s20_s20   ;;  %s769_s19 = sphi %s816_s19, %s1014_s19   ;;  %s765_s18 = sphi %s814_s18, %s1013_s18   ;;  %s761_s17 = sphi %s812_s17, %s1012_s17   ;;  %s757_s16 = sphi %s810_s16, %s1011_s16   ;;  %s753_s15 = sphi %s808_s15, %s1010_s15  }
   0x7   : > { %s39_s23 = sadd.s32 1, %s769_s19  ;;  %s76_s24 = sadd.s32 1, %s761_s17 }
   0x8   : > { %p41_p0 = scmp.ge.s32.totalorder %s39_s23, 2  ;;  %p83_p1 = scmp.ne.s32.totalorder %s761_s17, %s757_s16 }
   0x9   : > { %p84_p2 = scmp.eq.s32.totalorder %s773_s20, 0  ;;  %p89_p3 = scmp.ne.s32.totalorder %s757_s16, %s753_s15 }
   0xa   : > { %s1016_s23 = smov (%p41_p0, %s39_s23), 0  ;;  %p90_p5 = scmp.eq.s32.totalorder %s560_s21, 0 }
   0xb   : > { %p849_p4 = por %p84_p2, %p83_p1  ;;  %s71_s26 = ssub.s32 %s769_s19, %s1016_s23 }
   0xc   : > { %p173_p6 = scmp.eq.s32.totalorder %s560_s21, 1  ;;  %p74_p7 = scmp.eq.s32.totalorder %s71_s26, 0 }
   0xd   : > { %p855_p8 = por %p90_p5, %p89_p3  ;;  %p179_p10 = scmp.eq.s32.totalorder %s561_s22, 1 }
   0xe   : > { %p859_p9 = por %p173_p6, %p83_p1  ;;  %p604_p13 = scmp.lt.s32.totalorder %s773_s20, 2 }
   0xf   : > { %s864_s29 = scalar_select %p74_p7, %s761_s17, %s76_s24  }
  0x10   : > { %s1003_s28 = scalar_select %p859_p9, 1, 0 }
  0x11   : > { %p866_p11 = por %p179_p10, %p89_p3  ;;  %s209_s5 = sand.u32 1, %s761_s17  }
  0x12   : > { %s564_s6 = sshll.u32 %s209_s5, 4  ;;  %s578_s7 = sshll.u32 %s769_s19, 8 }
  0x13   : > { %s1004_s30 = scalar_select %p866_p11, 1, 0 }
  0x14   : > { %s877_s10 = scalar_lea.hbm %s996_s1, %s578_s7  ;;  %s213_s11 = scalar_lea.vmem [#allocation2], %s564_s6 }
  0x15   : > { %s221_s12 = sshll.u32 %s213_s11, 4  ;;  %p883_p0 = pnand %p604_p13, %p849_p4  ;;  %s879_s12 = int_to_ptr.vmem [resolvable:$true] %s221_s12 }
  0x16   : > { %s888_s14 = scalar_lea.sflag [#allocation3], %s209_s5  ;;  %s661_s21 = scalar_lea.hbm %s877_s10, 256 }
  0x17   : > { %p662_p2 = scmp.ne.s32.totalorder %s877_s10, %s661_s21  ;;  %p663_p3 = pneg %p883_p0 }
  0x18   : > { %s666_s25 = scalar_lea.hbm %s996_s1, 512  ;;  %p667_p4 = scmp.lt.u32.totalorder %s877_s10, %s996_s1 }
  0x19   : > { %p664_p5 = pnand %p663_p3, %p662_p2  ;;  %p668_p7 = scmp.lt.u32.totalorder %s666_s25, %s661_s21 }
  0x1a   : > { %p670_p13 = scmp.lt.u32.totalorder %s661_s21, %s877_s10 }
  0x1b   : > { %p665_p6 = pneg %p664_p5  ;;  %p669_p10 = por %p668_p7, %p667_p4 }
  0x1d   : > { %p671_p12 = por %p670_p13, %p669_p10 }
  0x1f   : > { %p672_p1 = pnand %p671_p12, %p665_p6 }
  0x21   : > { %675 = shalt.err (!%p672_p1)
}
  0x22   : > { %s676_s5 = scalar_lea.vmem %s879_s12, 256  ;;  %s775_s7 = smov [#allocation2]  }
  0x23   : > { %p677_p2 = scmp.ne.s32.totalorder %s879_s12, %s676_s5  ;;  %s681_s8 = sshll.u32 %s775_s7, 4  ;;  %s682_s8 = int_to_ptr.vmem [resolvable:$false] %s681_s8 }
  0x24   : > { %s683_s9 = scalar_lea.vmem %s682_s8, 512  ;;  %p684_p9 = scmp.lt.s32.totalorder %s879_s12, %s682_s8 }
  0x25   : > { %p679_p5 = pnand %p677_p2, %p663_p3  ;;  %p685_p4 = scmp.lt.s32.totalorder %s683_s9, %s676_s5 }
  0x27   : > { %p680_p11 = pneg %p679_p5  ;;  %p686_p7 = por %p685_p4, %p684_p9 }
  0x29   : > { %p687_p10 = pnand %p686_p7, %p680_p11 }
  0x2b   : > { %690 = shalt.err (!%p687_p10)
}
  0x2c   : > { %s776_s11 = smov 128   ;;  %s777_s21 = smov 8  }
  0x2d   : > { %599 = dma.hbm_to_vmem [thread:$0]  (!%p883_p0), %s877_s10, 256, %s879_s12, %s888_s14, %s776_s11, %s776_s11, %s777_s21  }
  0x2e   : > { %p248_p12 = scmp.lt.s32.totalorder %s773_s20, 3  ;;  %p1006_p1 = scmp.ge.s32.totalorder %s773_s20, 1 }
  0x30   : > { %p249_p3 = pnand %p1006_p1, %p248_p12 }
  0x31   : > { %s920_s22 = sand.u32 (!%p249_p3), 1, %s757_s16  }
  0x32   : > { %252 = sbr.rel (%p249_p3) target bundleno = 299 (0x12b), region = 36  ;;  %s568_s24 = sshll.u32 (!%p249_p3), %s920_s22, 4 }
  0x33   : > { %s255_s25 = scalar_lea.sflag (!%p249_p3), [#allocation3], %s920_s22  ;;  %s258_s26 = scalar_lea.vmem (!%p249_p3), [#allocation2], %s568_s24 }
  0x39   : > { %744 = dma.done.wait (%p855_p8), %s255_s25, 256  }
  0x3a   : > { %746 = vsyncadd (%p855_p8), %s255_s25, 4294967040  ;;  %p303_p9 = scmp.lt.s32.totalorder %s765_s18, 1  ;;  %v778_v0 = vmov 0.0|0.0   ;;  %vm779_vm0 = vmmov 0   ;;  %v780_v1 = vmov 0.0   ;;  %v781_v2 = vmov 0  }
  0x3b   : > { %589 = vmatprep.subr.bf16.mxu0 %v778_v0  ;;  %586 = vmatprep.mubr.msk.f32.mxu0 %vm779_vm0, %v780_v1  ;;  %v325_v3 = vld [vmem:[%s258_s26] sm:$0xff]  ;;  %v326_v4 = vld [vmem:[%s258_s26 + $0x8] sm:$0xff]  ;;  %vm333_vm1 = vcmask 130048   ;;  %s569_s8 = sshll.u32 %s920_s22, 3  ;;  %s575_s24 = sshll.u32 %s765_s18, 7 }
  0x3c   : > { %s304_s10 = scalar_select %p303_p9, %s765_s18, 1  ;;  %660 = vset.pattern.permute.xlu0 %v781_v2  ;;  %v590_v6 = vpack.c.bf16 %v326_v4, %v325_v3 }
  0x3d   : > { %s302_s25 = scalar_lea.vmem [#allocation5], %s569_s8  ;;  %s945_s14 = scalar_lea.hbm %s999_s4, %s575_s24 }
  0x3e   : > { %s570_s12 = sshll.u32 %s304_s10, 3  ;;  %591 = vmatpush3.bf16.msra.mxu0 %v590_v6  ;;  %s322_s21 = scalar_lea.vmem %s998_s3, %s304_s10 }
  0x3f   : > { %s309_s6 = scalar_lea.vmem %s995_s0, %s570_s12  ;;  %s316_s7 = scalar_lea.vmem %s997_s2, %s570_s12  ;;  %v573_v11 = vld [vmem:[%s322_s21] ss:$0 sm:$0xff] }
  0x40   : > { %v323_v5 = vld [vmem:[%s309_s6] sm:$0xff]  ;;  %s433_s26 = sshll.u32 %s302_s25, 4  ;;  %s418_s10 = scalar_lea.sflag [#allocation4], %s920_s22  ;;  %s947_s26 = int_to_ptr.vmem [resolvable:$true] %s433_s26 }
  0x41   : > { %v327_v7 = vld [vmem:[%s316_s7] sm:$0xff]  ;;  %v324_v8 = vmul.f32 -2.0, %v323_v5  ;;  %s691_s6 = scalar_lea.vmem %s947_s26, 128  ;;  %p1007_p11 = scmp.ne.s32.totalorder %s1003_s28, 0 }
  0x42   : > { %330 = vperm.xlu0 %660, %v327_v7   ;;  %p692_p8 = scmp.ne.s32.totalorder %s947_s26, %s691_s6  ;;  %s782_s18 = smov [#allocation5]  }
  0x43   : > { %587 = vmatmul.mubr.msk.f32.vlgmr.msra.gmra.mrb[0].mxu0 %vm333_vm1, %v324_v8  ;;  %s695_s5 = sshll.u32 %s782_s18, 4  ;;  %s696_s5 = int_to_ptr.vmem [resolvable:$false] %s695_s5 }
  0x44   : > { %p693_p0 = pnand %p692_p8, %p1007_p11  ;;  %s697_s27 = scalar_lea.vmem %s696_s5, 256 }
  0x45   : > { %p698_p13 = scmp.lt.s32.totalorder %s947_s26, %s696_s5  ;;  %p699_p2 = scmp.lt.s32.totalorder %s697_s27, %s691_s6 }
  0x46   : > { %p694_p6 = pneg %p693_p0 }
  0x47   : > { %p700_p5 = por %p699_p2, %p698_p13 }
  0x49   : > { %p701_p4 = pnand %p700_p5, %p694_p6 }
  0xc1   : > { %v331_v9 = vpop.permute.xlu0 %330 }
 0x116   : > { %v403_v10 = vpop.f32.mrb[0].mxu0 }
 0x117   : > { %v404_v12 = vadd.f32 %v403_v10, %v331_v9  ;;  %v588_v13 = vpop.f32.mrb[1].mxu0 }
 0x119   : > { %v414_v14 = vadd.f32 %v573_v11, %v404_v12 }
 0x11b   : > { %v415_v15 = vmax.f32 %v414_v14, 0.0 }
 0x11d   : > { %416 = vst.msk [vmem:[%s302_s25] sm:$0xff] %vm333_vm1, %v415_v15 }
 0x11e   : > { %704 = shalt.err (!%p701_p4)
}
 0x11f   : > { %s705_s22 = scalar_lea.hbm %s945_s14, 128  ;;  %s709_s9 = scalar_lea.hbm %s999_s4, 256 }
 0x120   : > { %p706_p7 = scmp.ne.s32.totalorder %s945_s14, %s705_s22  ;;  %p710_p1 = scmp.lt.u32.totalorder %s945_s14, %s999_s4 }
 0x121   : > { %p711_p3 = scmp.lt.u32.totalorder %s709_s9, %s705_s22  ;;  %p713_p8 = scmp.lt.u32.totalorder %s705_s22, %s945_s14 }
 0x122   : > { %p707_p10 = pnand %p706_p7, %p1007_p11 }
 0x123   : > { %p712_p9 = por %p711_p3, %p710_p1 }
 0x124   : > { %p708_p12 = pneg %p707_p10 }
 0x125   : > { %p714_p0 = por %p713_p8, %p712_p9 }
 0x127   : > { %p715_p6 = pnand %p714_p0, %p708_p12 }
 0x129   : > { %718 = shalt.err (!%p715_p6)
}
 0x12a   : > { %594 = dma.vmem_to_hbm [thread:$0]  (%p1007_p11), %s947_s26, 128, %s945_s14, %s418_s10  }
 0x12b PF: > { %s445_s24 = sand.u32 1, %s753_s15   ;;  %p1008_p13 = scmp.ne.s32.totalorder %s1004_s30, 0 }
 0x12c   : > { %p1009_p2 = scmp.ge.s32.totalorder %s773_s20, 2  ;;  %s446_s25 = scalar_lea.sflag [#allocation4], %s445_s24 }
 0x12e   : > { %p601_p5 = pnand %p1009_p2, %p1008_p13 }
 0x130   : > { %748 = dma.done.wait (!%p601_p5), %s446_s25, 128  }
 0x131   : > { %750 = vsyncadd (!%p601_p5), %s446_s25, 4294967168  ;;  %s20_s20 = sadd.s32 1, %s773_s20   ;;  %s1010_s15 = smov %s757_s16 }
 0x132   : > { %p17_p4 = scmp.ge.s32.totalorder %s20_s20, 4   ;;  %s1011_s16 = smov %s761_s17 }
 0x133   : > { %s1012_s17 = smov %s864_s29  ;;  %s1013_s18 = smov %s769_s19 }
 0x134   : > { %s1014_s19 = smov %s1016_s23  ;;  %19 = sbr.rel (!%p17_p4) target bundleno = 6 (0x6), region = 90 }
 0x13b   :  { %451 = vsyncpa [#allocation3], 1 }
 0x13c   :  { %453 = vsyncpa [#allocation3 + $0x1], 1 }
 0x13d   :  { %454 = vsyncpa [#allocation4], 1 }
 0x13e   :  { %456 = vsyncpa [#allocation4 + $0x1], 1 }

</bundles_post_ra>
